<compile_context>
chip_gen: v7x
topology: tpu7x:2x2x1
jax: 0.10.0
libtpu: 0.0.40
codegen_flags: <defaults>
</compile_context>

<pallas_src>
import functools

import jax
import jax.numpy as jnp
from jax.experimental import pallas as pl
from jax.experimental.pallas import tpu as pltpu

_LN_EPS = 1e-5   # nn.LayerNorm default eps
_VN_EPS = 1e-8   # _norm_no_nan clamp


def _layernorm_rows(s, w, b, eps):
    """Row-wise LayerNorm of s (T, ns) with affine (1, ns) params, f32 compute."""
    s = s.astype(jnp.float32)
    mu = jnp.mean(s, axis=-1, keepdims=True)
    d = s - mu
    var = jnp.mean(d * d, axis=-1, keepdims=True)
    return d * jax.lax.rsqrt(var + eps) * w + b


def _gvp_layernorm_kernel(w_ref, b_ref, s_ref, v_ref, s_out_ref, v_out_ref, *, nv, fold):
    # ---- scalar channels: standard LayerNorm over the last dim ----
    s_out_ref[...] = _layernorm_rows(
        s_ref[...],
        w_ref[...].astype(jnp.float32),
        b_ref[...].astype(jnp.float32),
        _LN_EPS,
    ).astype(s_out_ref.dtype)

    # ---- vector channels ----
    # v_ref is (T, fold*nv*3): `fold` consecutive nodes packed along lanes,
    # each node contributing nv*3 lanes ordered [c0x c0y c0z c1x c1y c1z ...].
    v = v_ref[...].astype(jnp.float32)
    v2 = v * v
    nv3 = nv * 3
    K = fold * nv3          # lanes per kernel row
    C = fold * nv           # vector channels per kernel row

    # Per-channel sums of squares: lane j belongs to channel c iff 3c <= j < 3c+3.
    jj = jax.lax.broadcasted_iota(jnp.int32, (K, C), 0)
    cc = jax.lax.broadcasted_iota(jnp.int32, (K, C), 1)
    g_ch = jnp.logical_and(jj >= cc * 3, jj < cc * 3 + 3).astype(jnp.float32)
    ss = jnp.dot(v2, g_ch, preferred_element_type=jnp.float32)      # (T, C)
    ss = jnp.maximum(ss, _VN_EPS)                                   # clamp per channel

    if fold == 1:
        # Single node per row: plain lane-reduction + broadcast.
        inv = jax.lax.rsqrt(jnp.mean(ss, axis=-1, keepdims=True))   # (T, 1)
        v_out_ref[...] = (v * inv).astype(v_out_ref.dtype)
        return

    # Per-node mean over its nv channels: channel m belongs to node r iff
    # r*nv <= m < (r+1)*nv.
    mm = jax.lax.broadcasted_iota(jnp.int32, (C, fold), 0)
    rr = jax.lax.broadcasted_iota(jnp.int32, (C, fold), 1)
    g_node = jnp.logical_and(mm >= rr * nv, mm < (rr + 1) * nv).astype(jnp.float32)
    vn = jnp.dot(ss, g_node, preferred_element_type=jnp.float32) / nv   # (T, fold)
    inv = jax.lax.rsqrt(vn)                                             # (T, fold)

    # Broadcast each node's inverse norm back onto its nv*3 lanes
    # (exact: one nonzero term per output element).
    br = jax.lax.broadcasted_iota(jnp.int32, (fold, K), 0)
    bj = jax.lax.broadcasted_iota(jnp.int32, (fold, K), 1)
    g_bcast = jnp.logical_and(bj >= br * nv3, bj < (br + 1) * nv3).astype(jnp.float32)
    inv_b = jnp.dot(inv, g_bcast, preferred_element_type=jnp.float32)   # (T, K)
    v_out_ref[...] = (v * inv_b).astype(v_out_ref.dtype)


def _scalar_layernorm_kernel(w_ref, b_ref, s_ref, s_out_ref):
    s_out_ref[...] = _layernorm_rows(
        s_ref[...],
        w_ref[...].astype(jnp.float32),
        b_ref[...].astype(jnp.float32),
        _LN_EPS,
    ).astype(s_out_ref.dtype)


def _choose_fold(n_rows, lane_unit, *, min_lanes=128, max_lanes=512):
    """Pick the row-fold factor k (a divisor of n_rows).

    Prefer the smallest k that makes k*lane_unit >= min_lanes (lane-dense V
    stream); otherwise the largest divisor with k*lane_unit <= max_lanes.
    """
    kmax = min(n_rows, max(1, max_lanes // lane_unit))
    divisors = [k for k in range(1, kmax + 1) if n_rows % k == 0]
    for k in divisors:
        if k * lane_unit >= min_lanes:
            return k
    return divisors[-1]


def gvp_layer_norm(x, weight=None, bias=None, *, target_rows=2048):
    """JAX/Pallas equivalent of FlexMol gvp.LayerNorm.forward.

    x: either a single array s (N, ns) (scalar channels only), or a tuple
       (s, V) with s: (N, ns) and V: (N, nv, 3).
    weight / bias: affine params of the scalar nn.LayerNorm (default 1 / 0).
    """
    single = not isinstance(x, (tuple, list))
    s = x if single else x[0]
    N, ns = s.shape
    if weight is None:
        weight = jnp.ones((ns,), s.dtype)
    if bias is None:
        bias = jnp.zeros((ns,), s.dtype)
    w2 = weight.reshape(1, ns)
    b2 = bias.reshape(1, ns)

    par_spec = pl.BlockSpec((1, ns), lambda i: (0, 0))
    cparams = pltpu.CompilerParams(dimension_semantics=("parallel",))

    if single:
        tm = N if N <= target_rows else (target_rows // 8) * 8
        grid = (pl.cdiv(N, tm),)
        s_spec = pl.BlockSpec((tm, ns), lambda i: (i, 0))
        return pl.pallas_call(
            _scalar_layernorm_kernel,
            out_shape=jax.ShapeDtypeStruct(s.shape, s.dtype),
            grid=grid,
            in_specs=[par_spec, par_spec, s_spec],
            out_specs=s_spec,
            compiler_params=cparams,
        )(w2, b2, s)

    v = x[1]
    _, nv, _ = v.shape
    nv3 = nv * 3

    # Fold `fold` nodes per kernel row for a lane-dense V stream.
    fold = _choose_fold(N, nv3)
    R = N // fold                     # folded rows
    K = fold * nv3                    # lanes per folded row
    v_fold = v.reshape(R, K)          # free row-major reshape: no transpose, no copy

    # Row tile over folded rows (multiple of 8, or the full folded extent).
    tf_target = max(1, target_rows // fold)
    if R <= tf_target:
        tf = R
    else:
        tf = min(R, max(8, (tf_target // 8) * 8))
    grid = (pl.cdiv(R, tf),)
    tm = tf * fold                    # original rows per grid step

    s_spec = pl.BlockSpec((tm, ns), lambda i: (i, 0))
    v_spec = pl.BlockSpec((tf, K), lambda i: (i, 0))

    s_out, v_out_fold = pl.pallas_call(
        functools.partial(_gvp_layernorm_kernel, nv=nv, fold=fold),
        out_shape=(
            jax.ShapeDtypeStruct(s.shape, s.dtype),
            jax.ShapeDtypeStruct((R, K), v.dtype),
        ),
        grid=grid,
        in_specs=[par_spec, par_spec, s_spec, v_spec],
        out_specs=(s_spec, v_spec),
        compiler_params=cparams,
    )(w2, b2, s, v_fold)

    return s_out, v_out_fold.reshape(N, nv, 3)


def _reference(s, v, w, b):
    """Pure-JAX reference matching the PyTorch module."""
    mu = s.mean(-1, keepdims=True)
    var = ((s - mu) ** 2).mean(-1, keepdims=True)
    s_out = (s - mu) / jnp.sqrt(var + _LN_EPS) * w + b
    vn = jnp.maximum(jnp.sum(v * v, axis=-1, keepdims=True), _VN_EPS)   # (N, nv, 1)
    denom = jnp.sqrt(jnp.mean(vn, axis=-2, keepdims=True))              # (N, 1, 1)
    return s_out, v / denom


if __name__ == "__main__":
    key = jax.random.PRNGKey(0)

    # ---- tuple (s, V) path, config 1 ----
    N, ns, nv = 16, 32, 4
    k_s, k_v, k_s2, k_v2 = jax.random.split(key, 4)
    s = jax.random.normal(k_s, (N, ns), dtype=jnp.float32)
    v = jax.random.normal(k_v, (N, nv, 3), dtype=jnp.float32)

    s_out, v_out = gvp_layer_norm((s, v))
    jax.block_until_ready((s_out, v_out))
    s_exp, v_exp = _reference(s, v, jnp.ones((ns,), jnp.float32), jnp.zeros((ns,), jnp.float32))
    assert jnp.allclose(s_out, s_exp, atol=1e-5, rtol=1e-5), "scalar LayerNorm mismatch"
    assert jnp.allclose(v_out, v_exp, atol=1e-5, rtol=1e-5), "vector renorm mismatch"

    # ---- scalar-only path (module constructed with nv == 0) ----
    s_only = gvp_layer_norm(s)
    jax.block_until_ready(s_only)
    assert jnp.allclose(s_only, s_exp, atol=1e-5, rtol=1e-5), "scalar-only path mismatch"

    # ---- tuple path, config 2 (different fold factor / odd sizes) ----
    N2, ns2, nv2 = 40, 24, 5
    s2 = jax.random.normal(k_s2, (N2, ns2), dtype=jnp.float32)
    v2 = jax.random.normal(k_v2, (N2, nv2, 3), dtype=jnp.float32)
    s2_out, v2_out = gvp_layer_norm((s2, v2))
    jax.block_until_ready((s2_out, v2_out))
    s2_exp, v2_exp = _reference(
        s2, v2, jnp.ones((ns2,), jnp.float32), jnp.zeros((ns2,), jnp.float32)
    )
    assert jnp.allclose(s2_out, s2_exp, atol=1e-5, rtol=1e-5), "scalar LayerNorm mismatch (cfg2)"
    assert jnp.allclose(v2_out, v2_exp, atol=1e-5, rtol=1e-5), "vector renorm mismatch (cfg2)"

    print("KERNEL_OK")
</pallas_src>

<mosaic_0001>
module attributes {stable_mosaic.version = 11 : i64} {
  func.func @_gvp_layernorm_kernel(%arg0: i32, %arg1: memref<1x32xf32, #tpu.memory_space<vmem>>, %arg2: memref<1x32xf32, #tpu.memory_space<vmem>>, %arg3: memref<16x32xf32, #tpu.memory_space<vmem>>, %arg4: memref<1x192xf32, #tpu.memory_space<vmem>>, %arg5: memref<16x32xf32, #tpu.memory_space<vmem>>, %arg6: memref<1x192xf32, #tpu.memory_space<vmem>>) attributes {dimension_semantics = [#tpu.dimension_semantics<parallel>], iteration_bounds = array<i64: 1>, scalar_prefetch = 0 : i64, scratch_operands = 0 : i64, tpu.core_type = #tpu.core_type<tc>, window_params = [{pipeline_mode = #tpu.pipeline_mode<synchronous>, transform_indices = @transform_0, window_bounds = array<i64: 1, 32>}, {pipeline_mode = #tpu.pipeline_mode<synchronous>, transform_indices = @transform_1, window_bounds = array<i64: 1, 32>}, {transform_indices = @transform_2, window_bounds = array<i64: 16, 32>}, {transform_indices = @transform_3, window_bounds = array<i64: 1, 192>}, {transform_indices = @transform_4, window_bounds = array<i64: 16, 32>}, {transform_indices = @transform_5, window_bounds = array<i64: 1, 192>}]} {
    %c0 = arith.constant 0 : index
    %c0_0 = arith.constant 0 : index
    %0 = vector.load %arg3[%c0, %c0_0] : memref<16x32xf32, #tpu.memory_space<vmem>>, vector<16x32xf32>
    %c0_1 = arith.constant 0 : index
    %c0_2 = arith.constant 0 : index
    %1 = vector.load %arg1[%c0_1, %c0_2] : memref<1x32xf32, #tpu.memory_space<vmem>>, vector<1x32xf32>
    %c0_3 = arith.constant 0 : index
    %c0_4 = arith.constant 0 : index
    %2 = vector.load %arg2[%c0_3, %c0_4] : memref<1x32xf32, #tpu.memory_space<vmem>>, vector<1x32xf32>
    %cst = arith.constant dense<0.000000e+00> : vector<16xf32>
    %3 = vector.multi_reduction <add>, %0, %cst [1] : vector<16x32xf32> to vector<16xf32>
    %4 = vector.shape_cast %3 : vector<16xf32> to vector<16x1xf32>
    %cst_5 = arith.constant 3.200000e+01 : f32
    %5 = vector.broadcast %cst_5 : f32 to vector<16x1xf32>
    %6 = arith.divf %4, %5 : vector<16x1xf32>
    %7 = vector.broadcast %6 : vector<16x1xf32> to vector<16x32xf32>
    %8 = arith.subf %0, %7 : vector<16x32xf32>
    %9 = arith.mulf %8, %8 : vector<16x32xf32>
    %cst_6 = arith.constant dense<0.000000e+00> : vector<16xf32>
    %10 = vector.multi_reduction <add>, %9, %cst_6 [1] : vector<16x32xf32> to vector<16xf32>
    %11 = vector.shape_cast %10 : vector<16xf32> to vector<16x1xf32>
    %cst_7 = arith.constant 3.200000e+01 : f32
    %12 = vector.broadcast %cst_7 : f32 to vector<16x1xf32>
    %13 = arith.divf %11, %12 : vector<16x1xf32>
    %cst_8 = arith.constant 9.99999974E-6 : f32
    %14 = vector.broadcast %cst_8 : f32 to vector<16x1xf32>
    %15 = arith.addf %13, %14 : vector<16x1xf32>
    %16 = math.rsqrt %15 : vector<16x1xf32>
    %17 = vector.broadcast %16 : vector<16x1xf32> to vector<16x32xf32>
    %18 = arith.mulf %8, %17 : vector<16x32xf32>
    %19 = vector.broadcast %1 : vector<1x32xf32> to vector<16x32xf32>
    %20 = arith.mulf %18, %19 : vector<16x32xf32>
    %21 = vector.broadcast %2 : vector<1x32xf32> to vector<16x32xf32>
    %22 = arith.addf %20, %21 : vector<16x32xf32>
    %c0_9 = arith.constant 0 : index
    %c0_10 = arith.constant 0 : index
    %23 = vector.load %arg5[%c0_9, %c0_10] : memref<16x32xf32, #tpu.memory_space<vmem>>, vector<16x32xf32>
    tpu.vector_store %arg5[%c0_9, %c0_10], %22 {strides = array<i32>} : memref<16x32xf32, #tpu.memory_space<vmem>>, vector<16x32xf32>,
    %c0_11 = arith.constant 0 : index
    %c0_12 = arith.constant 0 : index
    %24 = vector.load %arg4[%c0_11, %c0_12] : memref<1x192xf32, #tpu.memory_space<vmem>>, vector<1x192xf32>
    %25 = arith.mulf %24, %24 : vector<1x192xf32>
    %26 = tpu.iota {dimensions = array<i32: 0>} : vector<192x64xi32>
    %27 = tpu.iota {dimensions = array<i32: 1>} : vector<192x64xi32>
    %c3_i32 = arith.constant 3 : i32
    %28 = vector.broadcast %c3_i32 : i32 to vector<192x64xi32>
    %29 = arith.muli %27, %28 : vector<192x64xi32>
    %30 = arith.cmpi sge, %26, %29 : vector<192x64xi32>
    %c3_i32_13 = arith.constant 3 : i32
    %31 = vector.broadcast %c3_i32_13 : i32 to vector<192x64xi32>
    %32 = arith.muli %27, %31 : vector<192x64xi32>
    %c3_i32_14 = arith.constant 3 : i32
    %33 = vector.broadcast %c3_i32_14 : i32 to vector<192x64xi32>
    %34 = arith.addi %32, %33 : vector<192x64xi32>
    %35 = arith.cmpi slt, %26, %34 : vector<192x64xi32>
    %36 = arith.andi %30, %35 : vector<192x64xi1>
    %37 = arith.extui %36 : vector<192x64xi1> to vector<192x64xi32>
    %38 = arith.sitofp %37 : vector<192x64xi32> to vector<192x64xf32>
    %cst_15 = arith.constant dense<0.000000e+00> : vector<1x64xf32>
    %39 = tpu.matmul %25, %38, %cst_15 {dimension_numbers = #tpu.dot_dimension_numbers<[1], [0], [0], [1], [0, 0, 1, 1], [], []>} : vector<1x192xf32>, vector<192x64xf32>, vector<1x64xf32> -> vector<1x64xf32>
    %cst_16 = arith.constant 9.99999993E-9 : f32
    %40 = vector.broadcast %cst_16 : f32 to vector<1x64xf32>
    %41 = arith.maximumf %39, %40 : vector<1x64xf32>
    %42 = tpu.iota {dimensions = array<i32: 0>} : vector<64x16xi32>
    %43 = tpu.iota {dimensions = array<i32: 1>} : vector<64x16xi32>
    %c4_i32 = arith.constant 4 : i32
    %44 = vector.broadcast %c4_i32 : i32 to vector<64x16xi32>
    %45 = arith.muli %43, %44 : vector<64x16xi32>
    %46 = arith.cmpi sge, %42, %45 : vector<64x16xi32>
    %c1_i32 = arith.constant 1 : i32
    %47 = vector.broadcast %c1_i32 : i32 to vector<64x16xi32>
    %48 = arith.addi %43, %47 : vector<64x16xi32>
    %c4_i32_17 = arith.constant 4 : i32
    %49 = vector.broadcast %c4_i32_17 : i32 to vector<64x16xi32>
    %50 = arith.muli %48, %49 : vector<64x16xi32>
    %51 = arith.cmpi slt, %42, %50 : vector<64x16xi32>
    %52 = arith.andi %46, %51 : vector<64x16xi1>
    %53 = arith.extui %52 : vector<64x16xi1> to vector<64x16xi32>
    %54 = arith.sitofp %53 : vector<64x16xi32> to vector<64x16xf32>
    %cst_18 = arith.constant dense<0.000000e+00> : vector<1x16xf32>
    %55 = tpu.matmul %41, %54, %cst_18 {dimension_numbers = #tpu.dot_dimension_numbers<[1], [0], [0], [1], [0, 0, 1, 1], [], []>} : vector<1x64xf32>, vector<64x16xf32>, vector<1x16xf32> -> vector<1x16xf32>
    %cst_19 = arith.constant 4.000000e+00 : f32
    %56 = vector.broadcast %cst_19 : f32 to vector<1x16xf32>
    %57 = arith.divf %55, %56 : vector<1x16xf32>
    %58 = math.rsqrt %57 : vector<1x16xf32>
    %59 = tpu.iota {dimensions = array<i32: 0>} : vector<16x192xi32>
    %60 = tpu.iota {dimensions = array<i32: 1>} : vector<16x192xi32>
    %c12_i32 = arith.constant 12 : i32
    %61 = vector.broadcast %c12_i32 : i32 to vector<16x192xi32>
    %62 = arith.muli %59, %61 : vector<16x192xi32>
    %63 = arith.cmpi sge, %60, %62 : vector<16x192xi32>
    %c1_i32_20 = arith.constant 1 : i32
    %64 = vector.broadcast %c1_i32_20 : i32 to vector<16x192xi32>
    %65 = arith.addi %59, %64 : vector<16x192xi32>
    %c12_i32_21 = arith.constant 12 : i32
    %66 = vector.broadcast %c12_i32_21 : i32 to vector<16x192xi32>
    %67 = arith.muli %65, %66 : vector<16x192xi32>
    %68 = arith.cmpi slt, %60, %67 : vector<16x192xi32>
    %69 = arith.andi %63, %68 : vector<16x192xi1>
    %70 = arith.extui %69 : vector<16x192xi1> to vector<16x192xi32>
    %71 = arith.sitofp %70 : vector<16x192xi32> to vector<16x192xf32>
    %cst_22 = arith.constant dense<0.000000e+00> : vector<1x192xf32>
    %72 = tpu.matmul %58, %71, %cst_22 {dimension_numbers = #tpu.dot_dimension_numbers<[1], [0], [0], [1], [0, 0, 1, 1], [], []>} : vector<1x16xf32>, vector<16x192xf32>, vector<1x192xf32> -> vector<1x192xf32>
    %73 = arith.mulf %24, %72 : vector<1x192xf32>
    %c0_23 = arith.constant 0 : index
    %c0_24 = arith.constant 0 : index
    %74 = vector.load %arg6[%c0_23, %c0_24] : memref<1x192xf32, #tpu.memory_space<vmem>>, vector<1x192xf32>
    tpu.vector_store %arg6[%c0_23, %c0_24], %73 {strides = array<i32>} : memref<1x192xf32, #tpu.memory_space<vmem>>, vector<1x192xf32>,
    return
  }
  func.func @transform_0(%arg0: i32) -> (i32, i32) {
    %c0_i32 = arith.constant 0 : i32
    %c0_i32_0 = arith.constant 0 : i32
    %c0_i32_1 = arith.constant 0 : i32
    return %c0_i32, %c0_i32_0 : i32, i32
  }
  func.func @transform_1(%arg0: i32) -> (i32, i32) {
    %c0_i32 = arith.constant 0 : i32
    %c0_i32_0 = arith.constant 0 : i32
    %c0_i32_1 = arith.constant 0 : i32
    return %c0_i32, %c0_i32_0 : i32, i32
  }
  func.func @transform_2(%arg0: i32) -> (i32, i32) {
    %c0_i32 = arith.constant 0 : i32
    %c0_i32_0 = arith.constant 0 : i32
    return %arg0, %c0_i32 : i32, i32
  }
  func.func @transform_3(%arg0: i32) -> (i32, i32) {
    %c0_i32 = arith.constant 0 : i32
    %c0_i32_0 = arith.constant 0 : i32
    return %arg0, %c0_i32 : i32, i32
  }
  func.func @transform_4(%arg0: i32) -> (i32, i32) {
    %c0_i32 = arith.constant 0 : i32
    %c0_i32_0 = arith.constant 0 : i32
    return %arg0, %c0_i32 : i32, i32
  }
  func.func @transform_5(%arg0: i32) -> (i32, i32) {
    %c0_i32 = arith.constant 0 : i32
    %c0_i32_0 = arith.constant 0 : i32
    return %arg0, %c0_i32 : i32, i32
  }
}

</mosaic_0001>

<bundles_post_ra>
// kernel: tpu_custom_call.1
= control target key start
LH: loop header
LB: loop body
LE: loop exit
PB: predicated region body
PF: predicated region fallthrough
CT: control target
= control target key end

     0   :  { %11 = vsyncpa [#allocation3], 0  ;;  %s1346_s0 = inlined_call_operand.hbm [shape: f32[1,32], index: 0, kind: input, shape index: {}]   ;;  %s1347_s1 = inlined_call_operand.vmem [shape: f32[1,32], index: 1, kind: input, shape index: {}]   ;;  %s1348_s2 = inlined_call_operand.hbm [shape: f32[16,32], index: 2, kind: input, shape index: {}]   ;;  %s1349_s3 = inlined_call_operand.vmem [shape: f32[1,192], index: 3, kind: input, shape index: {}]   ;;  %s1350_s4 = inlined_call_operand.hbm [shape: f32[16,32], index: 4, kind: output, shape index: {0}]   ;;  %s1351_s5 = inlined_call_operand.hbm [shape: f32[1,192], index: 5, kind: output, shape index: {1}]  }
   0x1   :  { %12 = vsyncpa [#allocation6], 0 }
   0x2   :  { %13 = vsyncpa [#allocation4], 0 }
   0x3   :  { %14 = vsyncpa [#allocation9], 0  ;;  %s879_s18 = smov [#allocation2]   ;;  %s880_s20 = smov [#allocation5]  }
   0x4   :  { %s21_s19 = sshll.u32 %s879_s18, 4  ;;  %s32_s21 = sshll.u32 %s880_s20, 4  ;;  %s22_s19 = int_to_ptr.vmem [resolvable:$true] %s21_s19  ;;  %s920_s21 = int_to_ptr.vmem [resolvable:$true] %s32_s21 }
   0x5   :  { %s783_s24 = scalar_lea.hbm %s1346_s0, 16 }
   0x6   :  { %p784_p0 = scmp.ne.s32.totalorder %s1346_s0, %s783_s24  ;;  %p787_p1 = scmp.lt.u32.totalorder %s783_s24, %s1346_s0 }
   0x8   :  { %p789_p2 = pnand %p787_p1, %p784_p0 }
   0xa   :  { %792 = shalt.err (!%p789_p2)
}
   0xb   :  { %s793_s29 = scalar_lea.vmem %s22_s19, 16  ;;  %s797_s30 = scalar_lea.vmem %s22_s19, 32 }
   0xc   :  { %p794_p3 = scmp.ne.s32.totalorder %s22_s19, %s793_s29  ;;  %p798_p4 = scmp.lt.s32.totalorder %s22_s19, %s22_s19 }
   0xd   :  { %p799_p5 = scmp.lt.s32.totalorder %s797_s30, %s793_s29 }
   0xf   :  { %p800_p6 = por %p799_p5, %p798_p4 }
  0x11   :  { %p801_p7 = pnand %p800_p6, %p794_p3 }
  0x13   :  { %804 = shalt.err (!%p801_p7)
}
  0x14   :  { %24 = dma.hbm_to_vmem [thread:$0]  %s1346_s0, 16, %s22_s19, [#allocation3]  }
  0x15   :  { %s805_s10 = scalar_lea.hbm %s1348_s2, 256 }
  0x16   :  { %p806_p8 = scmp.ne.s32.totalorder %s1348_s2, %s805_s10  ;;  %p809_p9 = scmp.lt.u32.totalorder %s805_s10, %s1348_s2 }
  0x18   :  { %p811_p10 = pnand %p809_p9, %p806_p8 }
  0x1a   :  { %814 = shalt.err (!%p811_p10)
}
  0x1b   :  { %s815_s15 = scalar_lea.vmem %s920_s21, 256  ;;  %p820_p12 = scmp.lt.s32.totalorder %s920_s21, %s920_s21 }
  0x1c   :  { %p816_p11 = scmp.ne.s32.totalorder %s920_s21, %s815_s15  ;;  %p821_p13 = scmp.lt.s32.totalorder %s815_s15, %s815_s15 }
  0x1e   :  { %p822_p0 = por %p821_p13, %p820_p12 }
  0x20   :  { %p823_p1 = pnand %p822_p0, %p816_p11 }
  0x22   :  { %826 = shalt.err (!%p823_p1)
}
  0x23   :  { %s881_s0 = smov 128   ;;  %s882_s16 = smov 8  }
  0x24   :  { %38 = dma.hbm_to_vmem [thread:$0]  %s1348_s2, 256, %s920_s21, [#allocation6], %s881_s0, %s881_s0, %s882_s16  }
  0x25   :  { %871 = dma.done.wait [#allocation3], 16  }
  0x26   :  { %872 = vsyncadd [#allocation3], 4294967280  ;;  %v99_v0 = vlaneseq }
  0x27   :  { %873 = dma.done.wait [#allocation6], 256  }
  0x28   :  { %874 = vsyncadd [#allocation6], 4294967040  ;;  %v883_v1 = vmov 0.0|0.0   ;;  %v957_v2 = vshrl.u32 %v99_v0, 7  ;;  %v960_v3 = vand.u32 127, %v99_v0  ;;  %v1061_v23 = vld [vmem:[#allocation5] sm:$0xff] }
  0x29   :  { %714 = vmatprep.subr.bf16.mxu0 %v883_v1  ;;  %750 = vmatprep.subr.bf16.mxu1 %v883_v1  ;;  %v884_v12 = vmov 1.0|1.0   ;;  %v1037_v18 = vld [vmem:[%s1349_s3] sm:$0x3]  ;;  %v1079_v29 = vld [vmem:[#allocation5 + $0x8] sm:$0xff]  ;;  %v1382_v46 = vmov 0 }
  0x2a   :  { %v963_v4 = vadd.s32 8, %v957_v2  ;;  %v966_v5 = vmul.u32 3, %v960_v3  ;;  %v969_v6 = vadd.s32 16, %v957_v2  ;;  %v977_v8 = vadd.s32 24, %v957_v2  ;;  %v610_v35 = vld [vmem:[%s1347_s1] ss:$0 sm:$0xff] }
  0x2b   :  { %v986_v9 = vadd.s32 32, %v957_v2  ;;  %v993_v10 = vadd.s32 40, %v957_v2  ;;  %v1000_v11 = vadd.s32 48, %v957_v2  ;;  %v1008_v13 = vadd.s32 56, %v957_v2  ;;  %s887_s21 = smov [#allocation7]  }
  0x2c   :  { %vm127_vm0 = vcmp.ge.s32.totalorder %v957_v2, %v966_v5  ;;  %v974_v7 = vadd.s32 3, %v966_v5  ;;  %vm128_vm1 = vcmp.ge.s32.totalorder %v963_v4, %v966_v5  ;;  %vm129_vm5 = vcmp.ge.s32.totalorder %v969_v6, %v966_v5  ;;  %s582_s22 = sshll.u32 %s887_s21, 4  ;;  %s583_s22 = int_to_ptr.vmem [resolvable:$true] %s582_s22 }
  0x2d   :  { %vm130_vm8 = vcmp.ge.s32.totalorder %v977_v8, %v966_v5  ;;  %vm131_vm12 = vcmp.ge.s32.totalorder %v986_v9, %v966_v5  ;;  %vm132_vm15 = vcmp.ge.s32.totalorder %v993_v10, %v966_v5  ;;  %v108_v14 = vadd.s32 64, %v957_v2  ;;  %s827_s23 = scalar_lea.vmem %s583_s22, 256  ;;  %p832_p3 = scmp.lt.s32.totalorder %s583_s22, %s583_s22 }
  0x2e   :  { %vm152_vm2 = vcmp.lt.s32.totalorder %v957_v2, %v974_v7  ;;  %vm153_vm3 = vcmp.lt.s32.totalorder %v963_v4, %v974_v7  ;;  %vm154_vm6 = vcmp.lt.s32.totalorder %v969_v6, %v974_v7  ;;  %vm155_vm9 = vcmp.lt.s32.totalorder %v977_v8, %v974_v7  ;;  %p828_p2 = scmp.ne.s32.totalorder %s583_s22, %s827_s23  ;;  %p833_p4 = scmp.lt.s32.totalorder %s827_s23, %s827_s23 }
  0x2f   :  { %vm176_vm4 = vmand %vm127_vm0, %vm152_vm2  ;;  %vm156_vm13 = vcmp.lt.s32.totalorder %v986_v9, %v974_v7  ;;  %vm157_vm0 = vcmp.lt.s32.totalorder %v993_v10, %v974_v7  ;;  %v109_v16 = vadd.s32 72, %v957_v2  ;;  %v110_v17 = vadd.s32 80, %v957_v2 }
  0x30   :  { %vm177_vm7 = vmand %vm128_vm1, %vm153_vm3  ;;  %vm133_vm3 = vcmp.ge.s32.totalorder %v1000_v11, %v966_v5  ;;  %v111_v20 = vadd.s32 88, %v957_v2  ;;  %v1059_v22 = vmul.f32 %v1037_v18, %v1037_v18  ;;  %v112_v25 = vadd.s32 96, %v957_v2  ;;  %p834_p5 = por %p833_p4, %p832_p3 }
  0x31   :  { %vm715_vm10 = vmpackc.low %vm177_vm7, %vm176_vm4  ;;  %vm158_vm4 = vcmp.lt.s32.totalorder %v1000_v11, %v974_v7  ;;  %vm159_vm7 = vcmp.lt.s32.totalorder %v1008_v13, %v974_v7  ;;  %v255_v26 = vsub.s32 1, %v957_v2  ;;  %v113_v28 = vadd.s32 104, %v957_v2 }
  0x32   :  { %716 = vmatpush1.bf16.msk.msra.mxu0 %vm715_vm10, %v884_v12  ;;  %vm178_vm11 = vmand %vm129_vm5, %vm154_vm6  ;;  %vm134_vm6 = vcmp.ge.s32.totalorder %v1008_v13, %v966_v5  ;;  %vm135_vm10 = vcmp.ge.s32.totalorder %v108_v14, %v966_v5  ;;  %v114_v30 = vadd.s32 112, %v957_v2  ;;  %v115_v34 = vadd.s32 120, %v957_v2  ;;  %p835_p6 = pnand %p834_p5, %p828_p2 }
  0x33   :  { %717 = vmatprep.subr.bf16.mxu0 %v883_v1  ;;  %vm179_vm14 = vmand %vm130_vm8, %vm155_vm9  ;;  %v256_v31 = vrot.slane %v1059_v22, %v255_v26  ;;  %v116_v37 = vadd.s32 128, %v957_v2  ;;  %v117_v39 = vadd.s32 136, %v957_v2  ;;  %v118_v41 = vadd.s32 144, %v957_v2 }
  0x34   :  { %vm718_vm1 = vmpackc.low %vm179_vm14, %vm178_vm11  ;;  %vm160_vm11 = vcmp.lt.s32.totalorder %v108_v14, %v974_v7  ;;  %vm161_vm14 = vcmp.lt.s32.totalorder %v109_v16, %v974_v7  ;;  %v119_v43 = vadd.s32 152, %v957_v2  ;;  %v120_v45 = vadd.s32 160, %v957_v2 }
  0x35   :  { %vm1016_vm2 = vmand %vm131_vm12, %vm156_vm13  ;;  %vm136_vm13 = vcmp.ge.s32.totalorder %v109_v16, %v966_v5  ;;  %v121_v47 = vadd.s32 168, %v957_v2  ;;  %v341_v48 = vadd.s32 1, %v960_v3  ;;  %v122_v50 = vadd.s32 176, %v957_v2 }
  0x36   :  { %719 = vmatpush1.bf16.msk.msra.mxu0 %vm718_vm1, %v884_v12  ;;  %vm181_vm5 = vmand %vm132_vm15, %vm157_vm0  ;;  %vm1353_vm0 = vcmask 261120   ;;  %v1386_v51 = vmov 0  ;;  %v123_v52 = vadd.s32 184, %v957_v2  ;;  %v1388_v53 = vmov 0 }
  0x37   :  { %720 = vmatprep.subr.bf16.mxu0 %v883_v1  ;;  %vm721_vm8 = vmpackc.low %vm181_vm5, %vm1016_vm2  ;;  %vm137_vm2 = vcmp.ge.s32.totalorder %v110_v17, %v966_v5  ;;  %vm138_vm5 = vcmp.ge.s32.totalorder %v111_v20, %v966_v5  ;;  %v52_v32 = vsel %vm1353_vm0, %v1061_v23, 0.0  ;;  %v55_v36 = vsel %vm1353_vm0, %v1079_v29, 0.0 }
  0x38   :  { %vm1039_vm9 = vmand %vm133_vm3, %vm158_vm4  ;;  %vm162_vm3 = vcmp.lt.s32.totalorder %v110_v17, %v974_v7  ;;  %53 = vadd.xlane.f32.xlu0 %v52_v32  ;;  %v332_v54 = vmul.u32 4, %v960_v3  ;;  %v342_v55 = vmul.u32 4, %v341_v48  ;;  %v1390_v56 = vmov 0 }
  0x39   :  { %vm1046_vm12 = vmand %vm134_vm6, %vm159_vm7  ;;  %vm163_vm6 = vcmp.lt.s32.totalorder %v111_v20, %v974_v7  ;;  %vm1352_vm7 = vcmask 523264   ;;  %v1392_v57 = vmov 0  ;;  %v1394_v58 = vmov 0 }
  0x3a   :  { %722 = vmatpush1.bf16.msk.msra.mxu0 %vm721_vm8, %v884_v12  ;;  %vm724_vm15 = vmpackc.low %vm1046_vm12, %vm1039_vm9  ;;  %vm164_vm9 = vcmp.lt.s32.totalorder %v112_v25, %v974_v7  ;;  %659 = vmatprep.mubr.msk.f32.mxu0 %vm1352_vm7, %v256_v31  ;;  %vm140_vm12 = vcmp.ge.s32.totalorder %v113_v28, %v966_v5  ;;  %vm167_vm7 = vcmp.lt.s32.totalorder %v115_v34, %v974_v7  ;;  %v251_v60 = vsub.s32 0, %v957_v2 }
  0x3b   :  { %723 = vmatprep.subr.bf16.mxu0 %v883_v1  ;;  %vm1064_vm1 = vmand %vm135_vm10, %vm160_vm11  ;;  %v886_v62 = vmov 0.0   ;;  %v451_v17 = vadd.s32 128, %v960_v3  ;;  %v452_v19 = vmul.u32 12, %v957_v2  ;;  %v453_v20 = vmul.u32 12, %v963_v4 }
  0x3c   :  { %vm1072_vm4 = vmand %vm136_vm13, %vm161_vm14  ;;  %vm139_vm13 = vcmp.ge.s32.totalorder %v112_v25, %v966_v5  ;;  %vm165_vm14 = vcmp.lt.s32.totalorder %v113_v28, %v974_v7  ;;  %56 = vadd.xlane.f32.xlu0 %v55_v36  ;;  %v252_v61 = vrot.slane %v1059_v22, %v251_v60  ;;  %v458_v21 = vadd.s32 1, %v957_v2 }
  0x3d   :  { %vm727_vm8 = vmpackc.low %vm1072_vm4, %vm1064_vm1  ;;  %v459_v22 = vadd.s32 1, %v963_v4 }
  0x3e   :  { %725 = vmatpush1.bf16.msk.msra.mxu0 %vm724_vm15, %v884_v12  ;;  %vm1097_vm10 = vmand %vm137_vm2, %vm162_vm3  ;;  %vm141_vm2 = vcmp.ge.s32.totalorder %v114_v30, %v966_v5  ;;  %vm166_vm3 = vcmp.lt.s32.totalorder %v114_v30, %v974_v7 }
  0x3f   :  { %726 = vmatprep.subr.bf16.mxu0 %v883_v1  ;;  %vm1103_vm11 = vmand %vm138_vm5, %vm163_vm6  ;;  %vm142_vm6 = vcmp.ge.s32.totalorder %v115_v34, %v966_v5  ;;  %v461_v24 = vmul.u32 12, %v459_v22 }
  0x40   :  { %vm730_vm15 = vmpackc.low %vm1103_vm11, %vm1097_vm10  ;;  %vm170_vm10 = vcmp.lt.s32.totalorder %v118_v41, %v974_v7 }
  0x41   :  { %vm1127_vm5 = vmand %vm139_vm13, %vm164_vm9  ;;  %vm168_vm13 = vcmp.lt.s32.totalorder %v116_v37, %v974_v7 }
  0x42   :  { %728 = vmatpush1.bf16.msk.msra.mxu0 %vm727_vm8, %v884_v12  ;;  %vm1135_vm0 = vmand %vm140_vm12, %vm165_vm14  ;;  %vm143_vm8 = vcmp.ge.s32.totalorder %v116_v37, %v966_v5  ;;  %vm169_vm12 = vcmp.lt.s32.totalorder %v117_v39, %v974_v7 }
  0x43   :  { %729 = vmatprep.subr.bf16.mxu0 %v883_v1  ;;  %vm1140_vm1 = vmand %vm141_vm2, %vm166_vm3  ;;  %vm145_vm2 = vcmp.ge.s32.totalorder %v118_v41, %v966_v5 }
  0x44   :  { %vm1145_vm4 = vmand %vm142_vm6, %vm167_vm7  ;;  %vm144_vm7 = vcmp.ge.s32.totalorder %v117_v39, %v966_v5 }
  0x45   :  { %vm733_vm9 = vmpackc.low %vm1135_vm0, %vm1127_vm5  ;;  %vm146_vm0 = vcmp.ge.s32.totalorder %v119_v43, %v966_v5 }
  0x46   :  { %731 = vmatpush1.bf16.msk.msra.mxu0 %vm730_vm15, %v884_v12  ;;  %vm736_vm14 = vmpackc.low %vm1145_vm4, %vm1140_vm1  ;;  %vm171_vm15 = vcmp.lt.s32.totalorder %v119_v43, %v974_v7  ;;  %vm333_vm1 = vcmp.ge.s32.totalorder %v957_v2, %v332_v54  ;;  %vm343_vm4 = vcmp.lt.s32.totalorder %v957_v2, %v342_v55 }
  0x47   :  { %732 = vmatprep.subr.bf16.mxu0 %v883_v1  ;;  %vm1171_vm11 = vmand %vm143_vm8, %vm168_vm13  ;;  %vm147_vm8 = vcmp.ge.s32.totalorder %v120_v45, %v966_v5  ;;  %vm172_vm13 = vcmp.lt.s32.totalorder %v120_v45, %v974_v7 }
  0x48   :  { %v1383_v46 = vsel %vm1171_vm11, 4294967295, %v1382_v46  ;;  %vm1179_vm3 = vmand %vm144_vm7, %vm169_vm12  ;;  %vm148_vm7 = vcmp.ge.s32.totalorder %v121_v47, %v966_v5  ;;  %vm173_vm12 = vcmp.lt.s32.totalorder %v121_v47, %v974_v7  ;;  %vm175_vm11 = vcmp.lt.s32.totalorder %v123_v52, %v974_v7 }
  0x49   :  { %vm1185_vm5 = vmand %vm145_vm2, %vm170_vm10  ;;  %vm149_vm10 = vcmp.ge.s32.totalorder %v122_v50, %v966_v5 }
  0x4a   :  { %734 = vmatpush1.bf16.msk.msra.mxu0 %vm733_vm9, %v884_v12  ;;  %v1387_v51 = vsel %vm1185_vm5, 4294967295, %v1386_v51  ;;  %vm1191_vm6 = vmand %vm146_vm0, %vm171_vm15  ;;  %vm174_vm0 = vcmp.lt.s32.totalorder %v122_v50, %v974_v7  ;;  %vm150_vm9 = vcmp.ge.s32.totalorder %v123_v52, %v966_v5 }
  0x4b   :  { %735 = vmatprep.subr.bf16.mxu0 %v883_v1  ;;  %v1389_v53 = vsel %vm1191_vm6, 4294967295, %v1388_v53  ;;  %vm1216_vm15 = vmand %vm147_vm8, %vm172_vm13  ;;  %vm334_vm8 = vcmp.ge.s32.totalorder %v963_v4, %v332_v54  ;;  %vm344_vm13 = vcmp.lt.s32.totalorder %v963_v4, %v342_v55  ;;  %vm345_vm6 = vcmp.lt.s32.totalorder %v969_v6, %v342_v55 }
  0x4c   :  { %v1391_v56 = vsel %vm1216_vm15, 4294967295, %v1390_v56  ;;  %vm1223_vm2 = vmand %vm148_vm7, %vm173_vm12  ;;  %vm1398_vm7 = vnez %v1383_v46  ;;  %vm1401_vm15 = vnez %v1387_v51 }
  0x4d   :  { %v1393_v57 = vsel %vm1223_vm2, 4294967295, %v1392_v57  ;;  %vm1227_vm5 = vmand %vm149_vm10, %vm174_vm0  ;;  %vm335_vm0 = vcmp.ge.s32.totalorder %v969_v6, %v332_v54  ;;  %vm1400_vm10 = vnez %v1389_v53 }
  0x4e   :  { %737 = vmatpush1.bf16.msk.msra.mxu0 %vm736_vm14, %v884_v12  ;;  %v1395_v58 = vsel %vm1227_vm5, 4294967295, %v1394_v58  ;;  %vm1233_vm14 = vmand %vm150_vm9, %vm175_vm11  ;;  %vm347_vm11 = vcmp.lt.s32.totalorder %v986_v9, %v342_v55 }
  0x4f   :  { %738 = vmatprep.subr.bf16.mxu0 %v883_v1  ;;  %vm1399_vm12 = vmpackc.low %vm1179_vm3, %vm1398_vm7  ;;  %vm336_vm7 = vcmp.ge.s32.totalorder %v977_v8, %v332_v54 }
  0x50   :  { %vm351_vm9 = vmand %vm333_vm1, %vm343_vm4  ;;  %vm337_vm4 = vcmp.ge.s32.totalorder %v986_v9, %v332_v54 }
  0x51   :  { %vm352_vm3 = vmand %vm334_vm8, %vm344_vm13  ;;  %vm338_vm13 = vcmp.ge.s32.totalorder %v993_v10, %v332_v54 }
  0x52   :  { %740 = vmatpush1.bf16.msk.msra.mxu0 %vm1399_vm12, %v884_v12  ;;  %vm346_vm12 = vcmp.lt.s32.totalorder %v977_v8, %v342_v55  ;;  %vm751_vm2 = vmpackc.low %vm352_vm3, %vm351_vm9  ;;  %vm348_vm9 = vcmp.lt.s32.totalorder %v993_v10, %v342_v55 }
  0x53   :  { %741 = vmatprep.subr.bf16.mxu0 %v883_v1  ;;  %vm1402_vm5 = vmpackc.low %vm1400_vm10, %vm1401_vm15  ;;  %752 = vmatpush3.bf16.msk.msra.mxu1 %vm751_vm2, %v884_v12  ;;  %vm1404_vm2 = vnez %v1391_v56 }
  0x54   :  { %vm353_vm1 = vmand %vm335_vm0, %vm345_vm6  ;;  %753 = vmatprep.subr.bf16.mxu1 %v883_v1  ;;  %vm1403_vm6 = vnez %v1393_v57 }
  0x55   :  { %vm354_vm8 = vmand %vm336_vm7, %vm346_vm12  ;;  %vm339_vm12 = vcmp.ge.s32.totalorder %v1000_v11, %v332_v54 }
  0x56   :  { %743 = vmatpush1.bf16.msk.msra.mxu0 %vm1402_vm5, %v884_v12  ;;  %vm754_vm3 = vmpackc.low %vm354_vm8, %vm353_vm1  ;;  %vm340_vm1 = vcmp.ge.s32.totalorder %v1008_v13, %v332_v54  ;;  %vm350_vm8 = vcmp.lt.s32.totalorder %v1008_v13, %v342_v55 }
  0x57   :  { %744 = vmatprep.subr.bf16.mxu0 %v883_v1  ;;  %vm355_vm5 = vmand %vm337_vm4, %vm347_vm11  ;;  %755 = vmatpush3.bf16.msk.msra.mxu1 %vm754_vm3, %v884_v12  ;;  %vm1406_vm11 = vnez %v1395_v58  ;;  %vm349_vm4 = vcmp.lt.s32.totalorder %v1000_v11, %v342_v55 }
  0x58   :  { %vm1405_vm15 = vmpackc.low %vm1403_vm6, %vm1404_vm2  ;;  %756 = vmatprep.subr.bf16.mxu1 %v883_v1  ;;  %vm1410_vm2 = vcmask 523264  }
  0x59   :  { %vm356_vm10 = vmand %vm338_vm13, %vm348_vm9 }
  0x5a   :  { %746 = vmatpush1.bf16.msk.msra.mxu0 %vm1405_vm15, %v884_v12  ;;  %vm757_vm0 = vmpackc.low %vm356_vm10, %vm355_vm5  ;;  %vm1408_vm5 = vcmask 261120   ;;  %vm455_vm15 = vcmp.ge.s32.totalorder %v451_v17, %v452_v19  ;;  %vm457_vm10 = vcmp.ge.s32.totalorder %v451_v17, %v453_v20 }
  0x5b   :  { %747 = vmatprep.subr.bf16.mxu0 %v883_v1  ;;  %vm1407_vm7 = vmpackc.low %vm1233_vm14, %vm1406_vm11  ;;  %758 = vmatpush3.bf16.msk.msra.mxu1 %vm757_vm0, %v884_v12  ;;  %vm885_vm14 = vmmov 0   ;;  %vm465_vm11 = vcmp.lt.s32.totalorder %v451_v17, %v461_v24 }
  0x5c   :  { %759 = vmatprep.subr.bf16.mxu1 %v883_v1  ;;  %vm357_vm13 = vmand %vm339_vm12, %vm349_vm4  ;;  %711 = vmatprep.mubr.msk.f32.mxu1 %vm885_vm14, %v886_v62  ;;  %vm454_vm12 = vcmp.ge.s32.totalorder %v960_v3, %v452_v19 }
  0x5d   :  { %vm358_vm9 = vmand %vm340_vm1, %vm350_vm8  ;;  %vm456_vm8 = vcmp.ge.s32.totalorder %v960_v3, %v453_v20 }
  0x5e   :  { %749 = vmatpush1.bf16.msk.msra.mxu0 %vm1407_vm7, %v884_v12  ;;  %vm760_vm3 = vmpackc.low %vm358_vm9, %vm357_vm13  ;;  %vm464_vm13 = vcmp.lt.s32.totalorder %v960_v3, %v461_v24 }
  0x5f   :  { %761 = vmatpush3.bf16.msk.msra.mxu1 %vm760_vm3, %v884_v12  ;;  %vm1409_vm6 = vmmov %vm1408_vm5 }
  0x60   :  { %vm469_vm4 = vmand %vm457_vm10, %vm465_vm11 }
  0x61   :  { %326 = vmatmul.mubr.f32.vlgmr.msra.gmra.mrb[0].mxu0 %v252_v61  ;;  %vm468_vm14 = vmand %vm456_vm8, %vm464_vm13 }
  0xc5   :  { %v54_v63 = vpop.xlane.xlu0 %53 }
  0xc6   :  { %v59_v5 = vmul.f32 0.03125, %v54_v63 }
  0xc8   :  { %v61_v1 = vsub.f32 %v1061_v23, %v59_v5  ;;  %v460_v23 = vmul.u32 12, %v458_v21 }
  0xc9   :  { %v57_v6 = vpop.xlane.xlu0 %56 }
  0xca   :  { %v60_v7 = vmul.f32 0.03125, %v57_v6  ;;  %v63_v8 = vmul.f32 %v61_v1, %v61_v1  ;;  %vm463_vm0 = vcmp.lt.s32.totalorder %v451_v17, %v460_v23  ;;  %vm462_vm1 = vcmp.lt.s32.totalorder %v960_v3, %v460_v23  ;;  %v609_v3 = vld [vmem:[#allocation2] ss:$0 sm:$0xff] }
  0xcb   :  { %vm467_vm7 = vmand %vm455_vm15, %vm463_vm0  ;;  %vm478_vm15 = vcmask 130048  }
  0xcc   :  { %v62_v9 = vsub.f32 %v1079_v29, %v60_v7  ;;  %v65_v10 = vsel %vm1408_vm5, %v63_v8, 0.0  ;;  %vm762_vm9 = vmpackc.low %vm469_vm4, %vm467_vm7 }
  0xcd   :  { %66 = vadd.xlane.f32.xlu1 %v65_v10  ;;  %763 = vmatprep.subr.msk.bf16.mxu1 %vm762_vm9, %v884_v12  ;;  %vm466_vm3 = vmand %vm454_vm12, %vm462_vm1 }
  0xce   :  { %v64_v11 = vmul.f32 %v62_v9, %v62_v9  ;;  %vm764_vm5 = vmpackc.low %vm468_vm14, %vm466_vm3 }
  0xd0   :  { %v68_v13 = vsel %vm1409_vm6, %v64_v11, 0.0 }
  0xd1   :  { %69 = vadd.xlane.f32.xlu1 %v68_v13 }
 0x134   :  { %v327_v14 = vpop.f32.mrb[0].mxu0 }
 0x135   :  { %v331_v15 = vmax.f32 %v327_v14, 1e-08  ;;  %v329_v16 = vpop.f32.mrb[1].mxu0 }
 0x137   :  { %712 = vmatmul.mubr.msk.f32.vlgmr.msra.gmra.mrb[0].mxu1 %vm1410_vm2, %v331_v15  ;;  %vm1411_vm2 = vmmov %vm1409_vm6 }
 0x138   :  { %546 = vmatprep.mubr.f32.mxu1 %v886_v62  ;;  %765 = vmatpush1.bf16.msk.msra.mxu1 %vm764_vm5, %v884_v12 }
 0x15a   :  { %v67_v4 = vpop.xlane.xlu1 %66 }
 0x15b   :  { %v71_v26 = vmul.f32 0.03125, %v67_v4 }
 0x15d   :  { %v73_v28 = vadd.f32 1e-05, %v71_v26 }
 0x15e   :  { %v70_v25 = vpop.xlane.xlu1 %69 }
 0x15f   :  { %v72_v27 = vmul.f32 0.03125, %v70_v25  ;;  %777 = vrsqrt.f32 %v73_v28 }
 0x161   :  { %v74_v29 = vadd.f32 1e-05, %v72_v27 }
 0x163   :  { %779 = vrsqrt.f32 %v74_v29 }
 0x169   :  { %v778_v30 = vpop.eup %777 }
 0x16a   :  { %v77_v32 = vmul.f32 %v778_v30, %v61_v1 }
 0x16c   :  { %v85_v34 = vmul.f32 %v609_v3, %v77_v32 }
 0x16d   :  { %v780_v31 = vpop.eup %779 }
 0x16e   :  { %v78_v33 = vmul.f32 %v780_v31, %v62_v9  ;;  %v93_v36 = vadd.f32 %v610_v35, %v85_v34 }
 0x170   :  { %v86_v12 = vmul.f32 %v609_v3, %v78_v33  ;;  %95 = vst.msk [vmem:[#allocation7] sm:$0xff] %vm1409_vm6, %v93_v36 }
 0x172   :  { %v94_v37 = vadd.f32 %v610_v35, %v86_v12 }
 0x174   :  { %96 = vst.msk [vmem:[#allocation7 + $0x8] sm:$0xff] %vm1411_vm2, %v94_v37 }
 0x20a   :  { %v444_v38 = vpop.f32.mrb[0].mxu1 }
 0x20b   :  { %v449_v39 = vmul.f32 0.25, %v444_v38  ;;  %v713_v40 = vpop.f32.mrb[1].mxu1 }
 0x20d   :  { %781 = vrsqrt.f32 %v449_v39 }
 0x217   :  { %v782_v41 = vpop.eup %781 }
 0x218   :  { %685 = vmatmul.mubr.msk.f32.vlgmr.msra.gmra.mrb[2].mxu1 %vm478_vm15, %v782_v41 }
 0x219   :  { %838 = shalt.err (!%p835_p6)
}
 0x21a   :  { %s839_s25 = scalar_lea.hbm %s1350_s4, 256 }
 0x21b   :  { %p840_p7 = scmp.ne.s32.totalorder %s1350_s4, %s839_s25  ;;  %p843_p8 = scmp.lt.u32.totalorder %s839_s25, %s1350_s4 }
 0x21d   :  { %p845_p9 = pnand %p843_p8, %p840_p7 }
 0x21f   :  { %848 = shalt.err (!%p845_p9)
}
 0x220   :  { %588 = dma.vmem_to_hbm [thread:$0]  %s583_s22, 256, %s1350_s4, [#allocation4], %s881_s0, %s881_s0, %s882_s16   ;;  %v888_v42 = vmov 1966171168   ;;  %vm574_vm10 = vcmp.lt.s32.totalorder %v99_v0, 192 }
 0x221   :  { %v557_v43 = vunpack.c.l.s4 %v888_v42  ;;  %s889_s7 = smov [#allocation8]  }
 0x222   :  { %s595_s8 = sshll.u32 %s889_s7, 4  ;;  %s596_s8 = int_to_ptr.vmem [resolvable:$true] %s595_s8 }
 0x223   :  { %v558_v44 = vunpack.c.0.s8 %v557_v43  ;;  %s849_s9 = scalar_lea.vmem %s596_s8, 32  ;;  %p854_p11 = scmp.lt.s32.totalorder %s596_s8, %s596_s8 }
 0x224   :  { %p850_p10 = scmp.ne.s32.totalorder %s596_s8, %s849_s9  ;;  %p855_p12 = scmp.lt.s32.totalorder %s849_s9, %s849_s9 }
 0x225   :  { %v561_v46 = vsub.s32 %v558_v44, %v957_v2 }
 0x226   :  { %p856_p13 = por %p855_p12, %p854_p11 }
 0x228   :  { %p857_p0 = pnand %p856_p13, %p850_p10 }
 0x2eb   :  { %v548_v45 = vpop.f32.mrb[2].mxu1 }
 0x2ec   :  { %v550_v47 = vpop.f32.mrb[3].mxu1 }
 0x2ed   :  { %v555_v48 = vcombine.low %v548_v45, %v550_v47 }
 0x2ef   :  { %v562_v49 = vrot.slane %v555_v48, %v561_v46 }
 0x2f1   :  { %v569_v50 = vrot.slane %v562_v49, %v561_v46 }
 0x2f3   :  { %v571_v51 = vmul.f32 %v569_v50, %v1037_v18 }
 0x2f5   :  { %576 = vst.msk [vmem:[#allocation8] sm:$0x3] %vm574_vm10, %v571_v51 }
 0x2f6   :  { %860 = shalt.err (!%p857_p0)
}
 0x2f7   :  { %s861_s11 = scalar_lea.hbm %s1351_s5, 32 }
 0x2f8   :  { %p862_p1 = scmp.ne.s32.totalorder %s1351_s5, %s861_s11  ;;  %p865_p2 = scmp.lt.u32.totalorder %s861_s11, %s1351_s5 }
 0x2fa   :  { %p867_p3 = pnand %p865_p2, %p862_p1 }
 0x2fc   :  { %870 = shalt.err (!%p867_p3)
}
 0x2fd   :  { %598 = dma.vmem_to_hbm [thread:$0]  %s596_s8, 32, %s1351_s5, [#allocation9]  }
 0x2fe   :  { %875 = dma.done.wait [#allocation4], 256  }
 0x2ff   :  { %876 = vsyncadd [#allocation4], 4294967040 }
 0x300   :  { %877 = dma.done.wait [#allocation9], 32  }
 0x301   :  { %878 = vsyncadd [#allocation9], 4294967264 }
 0x302   :  { %605 = vsyncpa [#allocation3], 1 }
 0x303   :  { %606 = vsyncpa [#allocation6], 1 }
 0x304   :  { %607 = vsyncpa [#allocation4], 1 }
 0x305   :  { %608 = vsyncpa [#allocation9], 1 }

</bundles_post_ra>
